<compile_context>
chip_gen: v5e
topology: v5e:2x2
jax: 0.10.0
libtpu: 0.0.40
codegen_flags: <defaults>
</compile_context>

<pallas_src>
import functools

import jax
import jax.numpy as jnp
from jax.experimental import pallas as pl
from jax.experimental.pallas import tpu as pltpu


def _round_up(x: int, m: int) -> int:
    return ((x + m - 1) // m) * m


def _linear_kernel_acc_out(x_ref, w_ref, b_ref, o_ref):
    """f32 output: accumulate directly into the resident output block."""
    k = pl.program_id(2)

    @pl.when(k == 0)
    def _():
        o_ref[...] = jnp.zeros_like(o_ref)

    o_ref[...] += jnp.dot(
        x_ref[...], w_ref[...], preferred_element_type=jnp.float32
    )

    @pl.when(k == pl.num_programs(2) - 1)
    def _():
        # Epilogue: bias broadcast-add ((1, tn) over rows) + ReLU, in place.
        o_ref[...] = jnp.maximum(o_ref[...] + b_ref[...], 0.0)


def _linear_kernel_scratch(x_ref, w_ref, b_ref, o_ref, acc_ref):
    """Narrower output dtypes: f32 VMEM accumulator + cast epilogue."""
    k = pl.program_id(2)

    @pl.when(k == 0)
    def _():
        acc_ref[...] = jnp.zeros_like(acc_ref)

    acc_ref[...] += jnp.dot(
        x_ref[...], w_ref[...], preferred_element_type=jnp.float32
    )

    @pl.when(k == pl.num_programs(2) - 1)
    def _():
        out = jnp.maximum(acc_ref[...] + b_ref[...].astype(jnp.float32), 0.0)
        o_ref[...] = out.astype(o_ref.dtype)


@functools.partial(jax.jit, static_argnames=("tm", "tn", "tk"))
def my_linear(x, weight, bias, *, tm: int = 512, tn: int = 512, tk: int = 512):
    """relu(x @ weight + bias).  x: (B, K), weight: (K, N), bias: (N,)."""
    B, K = x.shape
    Kw, N = weight.shape
    assert K == Kw, "inner dims must match"
    out_dtype = x.dtype
    dsize = jnp.dtype(out_dtype).itemsize

    # ---- tile / padded-shape selection (all static Python) ------------------
    m_pad = _round_up(B, 8)      # sublane alignment
    k_pad = _round_up(K, 128)    # lane alignment
    n_pad = _round_up(N, 128)

    tm = min(tm, m_pad)
    tk = min(tk, k_pad)
    tn = min(tn, n_pad)

    # Skinny-M (tiny inference batches): weight-streaming regime — wide, deep
    # W tiles keep DMAs large and lane-dense; the kernel is purely W-BW bound.
    skinny = m_pad <= 128
    if skinny:
        tm = m_pad
        tn = min(max(tn, 1024), n_pad)
        tk = min(max(tk, 512), k_pad)

    m_pad = _round_up(m_pad, tm)
    k_pad = _round_up(k_pad, tk)
    n_pad = _round_up(n_pad, tn)

    # v7x megacore: make sure at least one "parallel" grid axis has >= 2
    # blocks so the second TensorCore isn't idle.  (No-op on v5e/v6e.)
    if (m_pad // tm) == 1 and (n_pad // tn) == 1 and n_pad % 256 == 0:
        tn = n_pad // 2

    grid_m, grid_n, grid_k = m_pad // tm, n_pad // tn, k_pad // tk
    grid = (grid_m, grid_n, grid_k)

    # ---- aligned fast path: skip zero-pad copies & output slice -------------
    padded = (m_pad, k_pad, n_pad) != (B, K, N)
    if padded:
        # Zero padding keeps the matmul exact (extra K cols contribute 0,
        # extra M/N rows/cols are sliced off below).
        xp = jnp.zeros((m_pad, k_pad), x.dtype).at[:B, :K].set(x)
        wp = jnp.zeros((k_pad, n_pad), weight.dtype).at[:K, :N].set(weight)
        bp = jnp.zeros((1, n_pad), bias.dtype).at[0, :N].set(bias)
    else:
        xp, wp, bp = x, weight, bias.reshape(1, N)

    # ---- BlockSpecs ----------------------------------------------------------
    x_spec = pl.BlockSpec((tm, tk), lambda i, j, k: (i, k))
    b_spec = pl.BlockSpec((1, tn), lambda i, j, k: (0, j))
    use_buffered_w = skinny and (grid_n * grid_k >= 3)
    w_spec = pl.BlockSpec((tk, tn), lambda i, j, k: (k, j))
    if use_buffered_w:
        try:
            # 3-deep W buffer hides HBM latency bubbles in the streaming regime.
            w_spec = pl.BlockSpec(
                (tk, tn), lambda i, j, k: (k, j), pipeline_mode=pl.Buffered(3)
            )
        except TypeError:
            use_buffered_w = False  # older jax without pipeline_mode kwarg

    acc_in_out = out_dtype == jnp.float32
    if acc_in_out:
        kernel = _linear_kernel_acc_out
        scratch_shapes = []
    else:
        kernel = _linear_kernel_scratch
        scratch_shapes = [pltpu.VMEM((tm, tn), jnp.float32)]

    # ---- VMEM budget / compiler params ---------------------------------------
    w_bufs = 3 if use_buffered_w else 2
    live_bytes = (
        2 * tm * tk * dsize          # X double buffer
        + w_bufs * tk * tn * dsize   # W buffers
        + 2 * tn * dsize             # bias buffers
        + 2 * tm * tn * dsize        # output double buffer
        + (0 if acc_in_out else tm * tn * 4)
    )
    vmem_limit = None
    if live_bytes > 12 * 1024 * 1024:
        # Only triggers for explicitly-requested large tiles (e.g. 1024 on
        # v5e/v6e); capped below v7x's 64 MiB physical VMEM.
        vmem_limit = min(int(live_bytes * 1.5), 64 * 1024 * 1024)

    cost = pl.CostEstimate(
        flops=2 * m_pad * k_pad * n_pad,
        transcendentals=0,
        bytes_accessed=(
            xp.size * dsize * grid_n      # X re-read per N tile
            + wp.size * dsize * grid_m    # W re-read per M tile
            + bp.size * dsize * grid_m
            + m_pad * n_pad * dsize       # output written once
        ),
    )

    out_padded = pl.pallas_call(
        kernel,
        out_shape=jax.ShapeDtypeStruct((m_pad, n_pad), out_dtype),
        grid_spec=pltpu.PrefetchScalarGridSpec(
            num_scalar_prefetch=0,
            grid=grid,
            in_specs=[x_spec, w_spec, b_spec],
            out_specs=pl.BlockSpec((tm, tn), lambda i, j, k: (i, j)),
            scratch_shapes=scratch_shapes,
        ),
        compiler_params=pltpu.CompilerParams(
            dimension_semantics=("parallel", "parallel", "arbitrary"),
            vmem_limit_bytes=vmem_limit,
        ),
        cost_estimate=cost,
    )(xp, wp, bp)

    if padded:
        return out_padded[:B, :N]
    return out_padded


def my_linear_ref(x, weight, bias):
    return jnp.maximum(x @ weight + bias, 0.0)


if __name__ == "__main__":
    key = jax.random.PRNGKey(0)
    keys = jax.random.split(key, 12)

    # --- 1. Module-sized test: MyLinear(5, 3) on batch 2 (skinny-M path) ----
    in_units, units, batch = 5, 3, 2
    x = jax.random.normal(keys[0], (batch, in_units), dtype=jnp.float32)
    weight = jax.random.normal(keys[1], (in_units, units), dtype=jnp.float32)
    bias = jax.random.normal(keys[2], (units,), dtype=jnp.float32)

    out = jax.block_until_ready(my_linear(x, weight, bias))
    ref = my_linear_ref(x, weight, bias)
    assert out.shape == (batch, units)
    assert jnp.allclose(out, ref, atol=1e-5, rtol=1e-5)

    # --- 2. Aligned fast path + megacore N-split + K-reduction accumulation --
    M2, K2, N2 = 512, 1024, 512   # no padding; grid = (1, 2, 2)
    x2 = jax.random.normal(keys[3], (M2, K2), dtype=jnp.float32)
    w2 = jax.random.normal(keys[4], (K2, N2), dtype=jnp.float32)
    b2 = jax.random.normal(keys[5], (N2,), dtype=jnp.float32)
    out2 = jax.block_until_ready(my_linear(x2, w2, b2))
    ref2 = my_linear_ref(x2, w2, b2)
    assert out2.shape == (M2, N2)
    assert jnp.allclose(out2, ref2, atol=1e-3, rtol=1e-4)

    # --- 3. Skinny-M weight-streaming config (wide W tiles, Buffered(3)) -----
    M3, K3, N3 = 4, 1024, 2048    # grid = (1, 2, 2) with tn=1024, tk=512
    x3 = jax.random.normal(keys[6], (M3, K3), dtype=jnp.float32)
    w3 = jax.random.normal(keys[7], (K3, N3), dtype=jnp.float32)
    b3 = jax.random.normal(keys[8], (N3,), dtype=jnp.float32)
    out3 = jax.block_until_ready(my_linear(x3, w3, b3))
    ref3 = my_linear_ref(x3, w3, b3)
    assert out3.shape == (M3, N3)
    assert jnp.allclose(out3, ref3, atol=1e-3, rtol=1e-4)

    # --- 4. Unaligned shapes: exercises the zero-pad path + output slice -----
    M4, K4, N4 = 272, 300, 260
    x4 = jax.random.normal(keys[9], (M4, K4), dtype=jnp.float32)
    w4 = jax.random.normal(keys[10], (K4, N4), dtype=jnp.float32)
    b4 = jax.random.normal(keys[11], (N4,), dtype=jnp.float32)
    out4 = jax.block_until_ready(my_linear(x4, w4, b4))
    ref4 = my_linear_ref(x4, w4, b4)
    assert out4.shape == (M4, N4)
    assert jnp.allclose(out4, ref4, atol=1e-3, rtol=1e-4)

    print("KERNEL_OK")
</pallas_src>

<mosaic_0001>
module attributes {stable_mosaic.version = 11 : i64} {
  func.func @_linear_kernel_acc_out(%arg0: i32, %arg1: i32, %arg2: i32, %arg3: memref<8x128xf32, #tpu.memory_space<vmem>>, %arg4: memref<128x128xf32, #tpu.memory_space<vmem>>, %arg5: memref<1x128xf32, #tpu.memory_space<vmem>>, %arg6: memref<8x128xf32, #tpu.memory_space<vmem>>) attributes {dimension_semantics = [#tpu.dimension_semantics<parallel>, #tpu.dimension_semantics<parallel>, #tpu.dimension_semantics<arbitrary>], iteration_bounds = array<i64: 1, 1, 1>, scalar_prefetch = 0 : i64, scratch_operands = 0 : i64, tpu.core_type = #tpu.core_type<tc>, window_params = [{transform_indices = @transform_0, window_bounds = array<i64: 8, 128>}, {transform_indices = @transform_1, window_bounds = array<i64: 128, 128>}, {transform_indices = @transform_2, window_bounds = array<i64: 1, 128>}, {transform_indices = @transform_3, window_bounds = array<i64: 8, 128>}]} {
    %c0_i32 = arith.constant 0 : i32
    %0 = arith.cmpi eq, %arg2, %c0_i32 : i32
    %1 = arith.extui %0 : i1 to i32
    %c0_i32_0 = arith.constant 0 : i32
    %2 = arith.cmpi ne, %1, %c0_i32_0 : i32
    scf.if %2 {
      %cst_10 = arith.constant 0.000000e+00 : f32
      %12 = vector.broadcast %cst_10 : f32 to vector<8x128xf32>
      %c0_11 = arith.constant 0 : index
      %c0_12 = arith.constant 0 : index
      %13 = vector.load %arg6[%c0_11, %c0_12] : memref<8x128xf32, #tpu.memory_space<vmem>>, vector<8x128xf32>
      tpu.vector_store %arg6[%c0_11, %c0_12], %12 {strides = array<i32>} : memref<8x128xf32, #tpu.memory_space<vmem>>, vector<8x128xf32>,
    } else {
    }
    %c0 = arith.constant 0 : index
    %c0_1 = arith.constant 0 : index
    %3 = vector.load %arg6[%c0, %c0_1] : memref<8x128xf32, #tpu.memory_space<vmem>>, vector<8x128xf32>
    %c0_2 = arith.constant 0 : index
    %c0_3 = arith.constant 0 : index
    %4 = vector.load %arg3[%c0_2, %c0_3] : memref<8x128xf32, #tpu.memory_space<vmem>>, vector<8x128xf32>
    %c0_4 = arith.constant 0 : index
    %c0_5 = arith.constant 0 : index
    %5 = vector.load %arg4[%c0_4, %c0_5] : memref<128x128xf32, #tpu.memory_space<vmem>>, vector<128x128xf32>
    %cst = arith.constant dense<0.000000e+00> : vector<8x128xf32>
    %6 = tpu.matmul %4, %5, %cst {dimension_numbers = #tpu.dot_dimension_numbers<[1], [0], [0], [1], [0, 0, 1, 1], [], []>} : vector<8x128xf32>, vector<128x128xf32>, vector<8x128xf32> -> vector<8x128xf32>
    %7 = arith.addf %3, %6 : vector<8x128xf32>
    %c0_6 = arith.constant 0 : index
    %c0_7 = arith.constant 0 : index
    %8 = vector.load %arg6[%c0_6, %c0_7] : memref<8x128xf32, #tpu.memory_space<vmem>>, vector<8x128xf32>
    tpu.vector_store %arg6[%c0_6, %c0_7], %7 {strides = array<i32>} : memref<8x128xf32, #tpu.memory_space<vmem>>, vector<8x128xf32>,
    %c0_i32_8 = arith.constant 0 : i32
    %9 = arith.cmpi eq, %arg2, %c0_i32_8 : i32
    %10 = arith.extui %9 : i1 to i32
    %c0_i32_9 = arith.constant 0 : i32
    %11 = arith.cmpi ne, %10, %c0_i32_9 : i32
    scf.if %11 {
      %c0_10 = arith.constant 0 : index
      %c0_11 = arith.constant 0 : index
      %12 = vector.load %arg6[%c0_10, %c0_11] : memref<8x128xf32, #tpu.memory_space<vmem>>, vector<8x128xf32>
      %c0_12 = arith.constant 0 : index
      %c0_13 = arith.constant 0 : index
      %13 = vector.load %arg5[%c0_12, %c0_13] : memref<1x128xf32, #tpu.memory_space<vmem>>, vector<1x128xf32>
      %14 = vector.broadcast %13 : vector<1x128xf32> to vector<8x128xf32>
      %15 = arith.addf %12, %14 : vector<8x128xf32>
      %cst_14 = arith.constant 0.000000e+00 : f32
      %16 = vector.broadcast %cst_14 : f32 to vector<8x128xf32>
      %17 = arith.maximumf %15, %16 : vector<8x128xf32>
      %c0_15 = arith.constant 0 : index
      %c0_16 = arith.constant 0 : index
      %18 = vector.load %arg6[%c0_15, %c0_16] : memref<8x128xf32, #tpu.memory_space<vmem>>, vector<8x128xf32>
      tpu.vector_store %arg6[%c0_15, %c0_16], %17 {strides = array<i32>} : memref<8x128xf32, #tpu.memory_space<vmem>>, vector<8x128xf32>,
    } else {
    }
    return
  }
  func.func @transform_0(%arg0: i32, %arg1: i32, %arg2: i32) -> (i32, i32) {
    %c0_i32 = arith.constant 0 : i32
    return %arg0, %arg2 : i32, i32
  }
  func.func @transform_1(%arg0: i32, %arg1: i32, %arg2: i32) -> (i32, i32) {
    %c0_i32 = arith.constant 0 : i32
    return %arg2, %arg1 : i32, i32
  }
  func.func @transform_2(%arg0: i32, %arg1: i32, %arg2: i32) -> (i32, i32) {
    %c0_i32 = arith.constant 0 : i32
    %c0_i32_0 = arith.constant 0 : i32
    return %c0_i32, %arg1 : i32, i32
  }
  func.func @transform_3(%arg0: i32, %arg1: i32, %arg2: i32) -> (i32, i32) {
    %c0_i32 = arith.constant 0 : i32
    return %arg0, %arg1 : i32, i32
  }
}

</mosaic_0001>

<bundles_post_ra>
// kernel: my_linear.1
= control target key start
LH: loop header
LB: loop body
LE: loop exit
PB: predicated region body
PF: predicated region fallthrough
CT: control target
= control target key end

     0   :  { %s153_s1 = inlined_call_operand.vmem [shape: f32[128,128], index: 1, kind: input, shape index: {}]   ;;  %s154_s2 = inlined_call_operand.vmem [shape: f32[1,128], index: 2, kind: input, shape index: {}]   ;;  %s155_s0 = inlined_call_operand.vmem [shape: f32[8,128], index: 0, kind: input, shape index: {}]   ;;  %s156_s3 = inlined_call_operand.vmem [shape: f32[8,128], index: 3, kind: output, shape index: {}]  }
   0x1   :  { %v36_v0 = vld [vmem:[%s153_s1 + $0x78] sm:$0xff]  ;;  %v35_v1 = vld [vmem:[%s153_s1 + $0x70] sm:$0xff]  ;;  %v34_v2 = vld [vmem:[%s153_s1 + $0x68] sm:$0xff] }
   0x2   :  { %37 = vmatpush.msra.mxu0 %v36_v0  ;;  %v33_v3 = vld [vmem:[%s153_s1 + $0x60] sm:$0xff]  ;;  %v32_v4 = vld [vmem:[%s153_s1 + $0x58] sm:$0xff]  ;;  %v31_v5 = vld [vmem:[%s153_s1 + $0x50] sm:$0xff] }
   0x3   :  { %v30_v6 = vld [vmem:[%s153_s1 + $0x48] sm:$0xff]  ;;  %v29_v7 = vld [vmem:[%s153_s1 + $0x40] sm:$0xff]  ;;  %v28_v8 = vld [vmem:[%s153_s1 + $0x38] sm:$0xff] }
   0x4   :  { %38 = vmatpush.msra.mxu0 %v35_v1  ;;  %v27_v9 = vld [vmem:[%s153_s1 + $0x30] sm:$0xff]  ;;  %v26_v10 = vld [vmem:[%s153_s1 + $0x28] sm:$0xff]  ;;  %v25_v11 = vld [vmem:[%s153_s1 + $0x20] sm:$0xff] }
   0x5   :  { %v24_v12 = vld [vmem:[%s153_s1 + $0x18] sm:$0xff]  ;;  %v23_v13 = vld [vmem:[%s153_s1 + $0x10] sm:$0xff]  ;;  %v22_v14 = vld [vmem:[%s153_s1 + $0x8] sm:$0xff] }
   0x6   :  { %39 = vmatpush.msra.mxu0 %v34_v2  ;;  %v21_v15 = vld [vmem:[%s153_s1] sm:$0xff] }
   0x7   :  { %v20_v16 = vld [vmem:[%s155_s0] sm:$0xff] }
   0x8   :  { %40 = vmatpush.msra.mxu0 %v33_v3  ;;  %v75_v17 = vld [vmem:[%s154_s2] ss:$0 sm:$0xff] }
   0xa   :  { %41 = vmatpush.msra.mxu0 %v32_v4 }
   0xc   :  { %42 = vmatpush.msra.mxu0 %v31_v5 }
   0xe   :  { %43 = vmatpush.msra.mxu0 %v30_v6 }
  0x10   :  { %44 = vmatpush.msra.mxu0 %v29_v7 }
  0x12   :  { %45 = vmatpush.msra.mxu0 %v28_v8 }
  0x14   :  { %46 = vmatpush.msra.mxu0 %v27_v9 }
  0x16   :  { %47 = vmatpush.msra.mxu0 %v26_v10 }
  0x18   :  { %48 = vmatpush.msra.mxu0 %v25_v11 }
  0x1a   :  { %49 = vmatpush.msra.mxu0 %v24_v12 }
  0x1c   :  { %50 = vmatpush.msra.mxu0 %v23_v13 }
  0x1e   :  { %51 = vmatpush.msra.mxu0 %v22_v14 }
  0x20   :  { %52 = vmatpush.msra.mxu0 %v21_v15 }
  0x21   :  { %53 = vmatmul.f32.vlgmr.msra.gmra.mxu0 %v20_v16 }
  0x9e   :  { %v54_v18 = vpop.f32.mrf.mxu0 }
  0x9f   :  { %v67_v19 = vadd.f32 %v75_v17, %v54_v18 }
  0xa1   :  { %v68_v20 = vmax.f32 %v67_v19, 0.0 }
  0xa3   :  { %69 = vst [vmem:[%s156_s3] sm:$0xff] %v68_v20 }

</bundles_post_ra>
